<compile_context>
chip_gen: v7x
topology: tpu7x:2x2x1
jax: 0.10.0
libtpu: 0.0.40
codegen_flags: <defaults>
</compile_context>

<pallas_src>
import functools

import jax
import jax.numpy as jnp
from jax.experimental import pallas as pl
from jax.experimental.pallas import tpu as pltpu

LANE = 128           # TPU vreg lane width; weight/bias are padded to this.
_NEG_BIG = -1e30     # bias for padded output lanes -> exp() underflows to 0.


def _categorical_logits_kernel(x_ref, wt_ref, b_ref, logits_ref, *, num_outputs):
    # Cast x to the matmul-operand dtype INSIDE the kernel (no-op for f32).
    x = x_ref[...].astype(wt_ref.dtype)
    # y = x @ W^T + b   (MXU matmul, f32 accumulation; bias/softmax in f32).
    y = jnp.dot(x, wt_ref[...], preferred_element_type=jnp.float32)
    y = y + b_ref[...]                       # (1, n_pad) f32 broadcast over rows

    # Numerically-stable log-softmax along the lane axis.  Padded lanes sit at
    # -1e30 so they never win the max and contribute exactly 0 to the sum.
    m = jnp.max(y, axis=-1, keepdims=True)
    z = y - m
    s = jnp.sum(jnp.exp(z), axis=-1, keepdims=True)
    out = z - jnp.log(s)

    # Store only the true categorical width (masked vst when num_outputs < 128,
    # but it eliminates the padded HBM writeback and any post-kernel slice).
    logits_ref[...] = out[:, :num_outputs].astype(logits_ref.dtype)


def prepare_categorical_params(weight, bias, matmul_dtype=jnp.float32):
    """One-time parameter preparation (do NOT call per forward step).

    weight: [num_outputs, num_inputs]  (PyTorch nn.Linear layout)
    bias:   [num_outputs]
    Returns (wt_padded [num_inputs, n_pad], bias_padded [1, n_pad] f32, num_outputs).

    matmul_dtype=jnp.bfloat16 halves the resident-weight footprint and HBM
    read traffic; bf16 MXU operands are native on v5e/v6e/v7x.  Keep f32 for
    bit-parity with an f32 reference (e.g. RL log-prob ratios).  The bias is
    ALWAYS kept in f32 (the -1e30 pad must not be quantized).
    """
    num_outputs, num_inputs = weight.shape
    n_pad = max(((num_outputs + LANE - 1) // LANE) * LANE, LANE)

    wt = jnp.zeros((num_inputs, n_pad), dtype=matmul_dtype)
    wt = wt.at[:, :num_outputs].set(weight.T.astype(matmul_dtype))

    b = jnp.full((1, n_pad), _NEG_BIG, dtype=jnp.float32)
    b = b.at[0, :num_outputs].set(bias.astype(jnp.float32))
    return wt, b, num_outputs


def categorical_forward(x, wt_padded, bias_padded, num_outputs, *,
                        block_rows=1024, out_dtype=jnp.float32,
                        single_buffer_weights=None):
    """x: [B, num_inputs]; params from prepare_categorical_params.

    Returns normalized logits [B, num_outputs] (out_dtype) of the
    FixedCategorical distribution (probs = exp(logits)).
    """
    B, num_inputs = x.shape
    n_pad = wt_padded.shape[1]
    assert bias_padded.shape == (1, n_pad)
    assert bias_padded.dtype == jnp.float32, "padded bias must stay f32"

    # Batch tile: full batch for tiny B; otherwise cap at ceil(B/2) rounded to
    # 8 sublanes so the 'parallel' axis has >= 2 steps (both v7x TCs), and at
    # block_rows (default 1024) to amortize per-grid-step overhead.
    block_rows = max(8, (block_rows // 8) * 8)
    if B <= 16:
        tb = B
    else:
        half = (((B + 1) // 2) + 7) // 8 * 8
        tb = min(block_rows, half)
    grid = (pl.cdiv(B, tb),)

    # Single-buffer the resident operands only when double-buffering the
    # weight would meaningfully eat VMEM (large heads); tiny heads keep the
    # default to avoid touching the pipeline for no measurable gain.
    w_bytes = num_inputs * n_pad * jnp.dtype(wt_padded.dtype).itemsize
    if single_buffer_weights is None:
        single_buffer_weights = (2 * w_bytes) > (8 << 20)
    resident_kwargs = (
        dict(pipeline_mode=pl.Buffered(1)) if single_buffer_weights else {}
    )

    return pl.pallas_call(
        functools.partial(_categorical_logits_kernel, num_outputs=num_outputs),
        out_shape=jax.ShapeDtypeStruct((B, num_outputs), out_dtype),
        grid_spec=pltpu.PrefetchScalarGridSpec(
            num_scalar_prefetch=0,
            grid=grid,
            in_specs=[
                pl.BlockSpec((tb, num_inputs), lambda i: (i, 0)),     # batch tile
                pl.BlockSpec((num_inputs, n_pad), lambda i: (0, 0),   # resident W^T
                             **resident_kwargs),
                pl.BlockSpec((1, n_pad), lambda i: (0, 0),            # resident bias
                             **resident_kwargs),
            ],
            out_specs=pl.BlockSpec((tb, num_outputs), lambda i: (i, 0)),
        ),
        compiler_params=pltpu.CompilerParams(
            # Batch axis is embarrassingly parallel -> shard across TensorCores.
            dimension_semantics=("parallel",),
            # vmem_limit_bytes left at default: tiles here are << the scoped
            # limit on every generation.  For very large heads on v5e (16 MiB
            # scoped default), raise it or add a K grid axis + f32 accumulator.
        ),
    )(x, wt_padded, bias_padded)


def orthogonal_init(key, rows, cols, gain=0.01):
    """Deterministic orthogonal init matching nn.init.orthogonal_ semantics."""
    flat_rows, flat_cols = (rows, cols) if rows >= cols else (cols, rows)
    a = jax.random.normal(key, (flat_rows, flat_cols), dtype=jnp.float32)
    q, r = jnp.linalg.qr(a)
    q = q * jnp.sign(jnp.diag(r))   # sign correction, as PyTorch does
    if rows < cols:
        q = q.T
    return gain * q[:rows, :cols]


if __name__ == "__main__":
    # Small shapes consistent with the module; batch=40 also exercises a
    # multi-step grid (2 tiles) with a ragged final tile.
    num_inputs, num_outputs, batch = 32, 16, 40

    key = jax.random.PRNGKey(0)
    k_w, k_x = jax.random.split(key)

    # Parameters: orthogonal(gain=0.01) weight, zero bias (the module's init_).
    weight = orthogonal_init(k_w, num_outputs, num_inputs, gain=0.01)  # [N_out, N_in]
    bias = jnp.zeros((num_outputs,), dtype=jnp.float32)
    x = jax.random.normal(k_x, (batch, num_inputs), dtype=jnp.float32)

    # Plain-JAX reference.
    y_ref = x @ weight.T + bias
    logits_ref = jax.nn.log_softmax(y_ref, axis=-1)
    probs_ref = jax.nn.softmax(y_ref, axis=-1)

    # --- f32 operand path (tight tolerance vs f32 reference) ---
    wt_f32, b_f32, n_out = prepare_categorical_params(weight, bias, jnp.float32)
    logits = categorical_forward(x, wt_f32, b_f32, n_out)
    jax.block_until_ready(logits)
    probs = jnp.exp(logits)   # probs derived outside the kernel (not emitted)

    assert logits.shape == (batch, num_outputs)
    assert jnp.allclose(logits, logits_ref, atol=1e-5, rtol=1e-5)
    assert jnp.allclose(probs, probs_ref, atol=1e-5, rtol=1e-5)
    assert jnp.allclose(jnp.sum(probs, axis=-1), 1.0, atol=1e-5)

    # --- bf16 operand + bf16 output path (HBM byte-reduction; f32 accum/softmax) ---
    wt_bf16, b_bf16, _ = prepare_categorical_params(weight, bias, jnp.bfloat16)
    logits_bf16 = categorical_forward(x, wt_bf16, b_bf16, n_out,
                                      out_dtype=jnp.bfloat16)
    jax.block_until_ready(logits_bf16)
    assert logits_bf16.dtype == jnp.bfloat16
    assert jnp.allclose(logits_bf16.astype(jnp.float32), logits_ref,
                        atol=3e-2, rtol=2e-2)

    # TODO(synk): FixedCategorical.sample()/log_prob()/entropy() are consumer-side
    # ops on these logits and are intentionally not implemented in the kernel.
    print("KERNEL_OK")
</pallas_src>

<mosaic_0001>
module attributes {stable_mosaic.version = 11 : i64} {
  func.func @_categorical_logits_kernel(%arg0: i32, %arg1: memref<24x32xf32, #tpu.memory_space<vmem>>, %arg2: memref<32x128xf32, #tpu.memory_space<vmem>>, %arg3: memref<1x128xf32, #tpu.memory_space<vmem>>, %arg4: memref<24x16xf32, #tpu.memory_space<vmem>>) attributes {dimension_semantics = [#tpu.dimension_semantics<parallel>], iteration_bounds = array<i64: 2>, scalar_prefetch = 0 : i64, scratch_operands = 0 : i64, tpu.core_type = #tpu.core_type<tc>, window_params = [{transform_indices = @transform_0, window_bounds = array<i64: 24, 32>}, {pipeline_mode = #tpu.pipeline_mode<synchronous>, transform_indices = @transform_1, window_bounds = array<i64: 32, 128>}, {pipeline_mode = #tpu.pipeline_mode<synchronous>, transform_indices = @transform_2, window_bounds = array<i64: 1, 128>}, {transform_indices = @transform_3, window_bounds = array<i64: 24, 16>}]} {
    %c0 = arith.constant 0 : index
    %c0_0 = arith.constant 0 : index
    %0 = vector.load %arg1[%c0, %c0_0] : memref<24x32xf32, #tpu.memory_space<vmem>>, vector<24x32xf32>
    %c0_1 = arith.constant 0 : index
    %c0_2 = arith.constant 0 : index
    %1 = vector.load %arg2[%c0_1, %c0_2] : memref<32x128xf32, #tpu.memory_space<vmem>>, vector<32x128xf32>
    %cst = arith.constant dense<0.000000e+00> : vector<24x128xf32>
    %2 = tpu.matmul %0, %1, %cst {dimension_numbers = #tpu.dot_dimension_numbers<[1], [0], [0], [1], [0, 0, 1, 1], [], []>} : vector<24x32xf32>, vector<32x128xf32>, vector<24x128xf32> -> vector<24x128xf32>
    %c0_3 = arith.constant 0 : index
    %c0_4 = arith.constant 0 : index
    %3 = vector.load %arg3[%c0_3, %c0_4] : memref<1x128xf32, #tpu.memory_space<vmem>>, vector<1x128xf32>
    %4 = vector.broadcast %3 : vector<1x128xf32> to vector<24x128xf32>
    %5 = arith.addf %2, %4 : vector<24x128xf32>
    %cst_5 = arith.constant dense<0xFF800000> : vector<24xf32>
    %6 = vector.multi_reduction <maximumf>, %5, %cst_5 [1] : vector<24x128xf32> to vector<24xf32>
    %7 = vector.shape_cast %6 : vector<24xf32> to vector<24x1xf32>
    %8 = vector.broadcast %7 : vector<24x1xf32> to vector<24x128xf32>
    %9 = arith.subf %5, %8 : vector<24x128xf32>
    %10 = math.exp %9 : vector<24x128xf32>
    %cst_6 = arith.constant dense<0.000000e+00> : vector<24xf32>
    %11 = vector.multi_reduction <add>, %10, %cst_6 [1] : vector<24x128xf32> to vector<24xf32>
    %12 = vector.shape_cast %11 : vector<24xf32> to vector<24x1xf32>
    %13 = math.log %12 : vector<24x1xf32>
    %14 = vector.broadcast %13 : vector<24x1xf32> to vector<24x128xf32>
    %15 = arith.subf %9, %14 : vector<24x128xf32>
    %16 = vector.extract_strided_slice %15 {offsets = [0, 0], sizes = [24, 16], strides = [1, 1]} : vector<24x128xf32> to vector<24x16xf32>
    %c0_7 = arith.constant 0 : index
    %c0_8 = arith.constant 0 : index
    %17 = vector.load %arg4[%c0_7, %c0_8] : memref<24x16xf32, #tpu.memory_space<vmem>>, vector<24x16xf32>
    tpu.vector_store %arg4[%c0_7, %c0_8], %16 {strides = array<i32>} : memref<24x16xf32, #tpu.memory_space<vmem>>, vector<24x16xf32>,
    return
  }
  func.func @transform_0(%arg0: i32) -> (i32, i32) {
    %c0_i32 = arith.constant 0 : i32
    %c0_i32_0 = arith.constant 0 : i32
    return %arg0, %c0_i32 : i32, i32
  }
  func.func @transform_1(%arg0: i32) -> (i32, i32) {
    %c0_i32 = arith.constant 0 : i32
    %c0_i32_0 = arith.constant 0 : i32
    %c0_i32_1 = arith.constant 0 : i32
    return %c0_i32, %c0_i32_0 : i32, i32
  }
  func.func @transform_2(%arg0: i32) -> (i32, i32) {
    %c0_i32 = arith.constant 0 : i32
    %c0_i32_0 = arith.constant 0 : i32
    %c0_i32_1 = arith.constant 0 : i32
    return %c0_i32, %c0_i32_0 : i32, i32
  }
  func.func @transform_3(%arg0: i32) -> (i32, i32) {
    %c0_i32 = arith.constant 0 : i32
    %c0_i32_0 = arith.constant 0 : i32
    return %arg0, %c0_i32 : i32, i32
  }
}

</mosaic_0001>

<bundles_post_ra>
// kernel: tpu_custom_call.1
= control target key start
LH: loop header
LB: loop body
LE: loop exit
PB: predicated region body
PF: predicated region fallthrough
CT: control target
= control target key end

     0   :  { %s831_s12 = smov 0   ;;  %s833_s13 = smov 0   ;;  %s928_s0 = inlined_call_operand.vmem [shape: f32[40,32], index: 0, kind: input, shape index: {}]   ;;  %s929_s1 = inlined_call_operand.vmem [shape: f32[32,128], index: 1, kind: input, shape index: {}]   ;;  %s930_s2 = inlined_call_operand.vmem [shape: f32[1,128], index: 2, kind: input, shape index: {}]   ;;  %s931_s3 = inlined_call_operand.vmem [shape: f32[40,16], index: 3, kind: output, shape index: {}]  }
   0x1   :  { %s835_s14 = smov 0  }
   0x2 LB: > { %s844_s15 = sadd.s32 4294967295, %s774_s14   ;;  %s846_s16 = sadd.s32 1, %s774_s14   ;;  %s774_s14 = sphi %s835_s14, %s935_s14   ;;  %s770_s13 = sphi %s833_s13, %s934_s13   ;;  %s766_s12 = sphi %s831_s12, %s933_s12  }
   0x3   : > { %s85_s17 = ssub.s32 %s774_s14, %s846_s16  ;;  %s88_s18 = sadd.s32 1, %s770_s13 }
   0x4   : > { %p86_p0 = scmp.eq.s32.totalorder %s85_s17, 0  ;;  %p98_p1 = scmp.ne.s32.totalorder %s770_s13, %s766_s12 }
   0x5   : > { %p99_p2 = scmp.eq.s32.totalorder %s844_s15, 1  ;;  %p558_p3 = scmp.ge.s32.totalorder %s774_s14, 1 }
   0x6   : > { %s854_s19 = scalar_select %p86_p0, %s770_s13, %s88_s18  }
   0x7   : > { %p856_p4 = por %p99_p2, %p98_p1  ;;  %p146_p5 = scmp.lt.s32.totalorder %s774_s14, 3 }
   0x9   : > { %p147_p6 = pnand %p558_p3, %p146_p5 }
   0xa   : > { %v195_v0 = vld [vmem:[%s929_s1] sm:$0xff] (!%p147_p6)  ;;  %v196_v1 = vld [vmem:[%s929_s1 + $0x8] sm:$0xff] (!%p147_p6)  ;;  %v197_v2 = vld [vmem:[%s929_s1 + $0x10] sm:$0xff] (!%p147_p6)  ;;  %v808_v3 = vmov (!%p147_p6), 0.0|0.0   ;;  %s873_s29 = smul.u32 (!%p147_p6), 3, %s844_s15  ;;  %vm809_vm0 = vmmov (!%p147_p6), 0  }
   0xb   : > { %150 = sbr.rel (%p147_p6) target bundleno = 618 (0x26a), region = 32  ;;  %601 = vmatprep.subr.bf16.mxu0 (!%p147_p6), %v808_v3  ;;  %607 = vmatprep.subr.bf16.mxu1 (!%p147_p6), %v808_v3  ;;  %v602_v4 = vpack.c.bf16 (!%p147_p6), %v196_v1, %v195_v0  ;;  %v198_v5 = vld [vmem:[%s929_s1 + $0x18] sm:$0xff] (!%p147_p6)  ;;  %v810_v6 = vmov (!%p147_p6), 0.0   ;;  %vm206_vm1 = vcmask (!%p147_p6), 261120   ;;  %v560_v11 = vld [vmem:[%s930_s2] ss:$0 sm:$0xff] (!%p147_p6) }
   0xc   : > { %592 = vmatprep.mubr.msk.f32.mxu0 (!%p147_p6), %vm809_vm0, %v810_v6  ;;  %595 = vmatprep.mubr.msk.f32.mxu1 (!%p147_p6), %vm809_vm0, %v810_v6  ;;  %v605_v7 = vpack.c.bf16 (!%p147_p6), %v198_v5, %v197_v2  ;;  %p178_p7 = scmp.lt.s32.totalorder (!%p147_p6), %s873_s29, 4  ;;  %s170_s10 = sand.u32 (!%p147_p6), 1, %s766_s12   ;;  %vm326_vm2 = vcmask (!%p147_p6), 130048  }
   0xd   : > { %603 = vmatpush3.bf16.msra.mxu0 (!%p147_p6), %v602_v4  ;;  %609 = vmatpush3.bf16.msra.mxu1 (!%p147_p6), %v602_v4  ;;  %s611_s11 = smul.u32 (!%p147_p6), 24, %s170_s10 }
   0xe   : > { %604 = vmatprep.subr.bf16.mxu0 (!%p147_p6), %v808_v3  ;;  %608 = vmatprep.subr.bf16.mxu1 (!%p147_p6), %v808_v3 }
   0xf   : > { %s887_s14 = scalar_lea.vmem (!%p147_p6), [#allocation2], %s611_s11  }
  0x11   : > { %606 = vmatpush3.bf16.msra.mxu0 (!%p147_p6), %v605_v7  ;;  %610 = vmatpush3.bf16.msra.mxu1 (!%p147_p6), %v605_v7 }
  0x12   : > { %s179_s30 = scalar_select %p178_p7, %s873_s29, 4 }
  0x13   : > { %s338_s12 = ssub.s32 (%p856_p4), 5, %s873_s29  ;;  %s576_s17 = smul.u32 (%p856_p4), 24, %s844_s15 }
  0x14   : > { %s559_s4 = sshll.u32 %s179_s30, 3  ;;  %p339_p8 = scmp.lt.s32.totalorder (%p856_p4), %s338_s12, 3 }
  0x15   : > { %s181_s7 = scalar_lea.vmem %s928_s0, %s559_s4  ;;  %s899_s22 = scalar_lea.vmem (%p856_p4), %s931_s3, %s576_s17  }
  0x16   : > { %v192_v8 = vld [vmem:[%s181_s7] sm:$0xff]  ;;  %v193_v9 = vld [vmem:[%s181_s7 + $0x8] sm:$0xff]  ;;  %v194_v10 = vld [vmem:[%s181_s7 + $0x10] sm:$0xff] }
  0x17   : > { %593 = vmatmul.mubr.msk.f32.vlgmr.msra.gmra.mrb[0].mxu0 %vm206_vm1, %v192_v8  ;;  %596 = vmatmul.mubr.msk.f32.vlgmr.msra.gmra.mrb[0].mxu1 %vm206_vm1, %v193_v9 }
  0x18   : > { %598 = vmatprep.mubr.msk.f32.mxu1 %vm809_vm0, %v810_v6 }
  0x1b   : > { %599 = vmatmul.mubr.msk.f32.gmra.mrb[2].mxu1 %vm206_vm1, %v194_v10 }
  0xea   : > { %v282_v12 = vpop.f32.mrb[0].mxu0  ;;  %v287_v13 = vpop.f32.mrb[0].mxu1 }
  0xeb   : > { %v283_v14 = vadd.f32 %v560_v11, %v282_v12  ;;  %v594_v15 = vpop.f32.mrb[1].mxu0  ;;  %v597_v16 = vpop.f32.mrb[1].mxu1  ;;  %v288_v18 = vadd.f32 %v560_v11, %v287_v13 }
  0xed   : > { %296 = vmax.xlane.f32.xlu0 %v283_v14 }
  0xee   : > { %v292_v17 = vpop.f32.mrb[2].mxu1 }
  0xef   : > { %v293_v19 = vadd.f32 %v560_v11, %v292_v17  ;;  %v600_v20 = vpop.f32.mrb[3].mxu1 }
  0xf1   : > { %300 = vmax.xlane.f32.xlu1 %v293_v19  ;;  %298 = vmax.xlane.f32.xlu0 %v288_v18 }
 0x17a   : > { %v297_v21 = vpop.xlane.xlu0 %296 }
 0x17b   : > { %v302_v22 = vsub.f32 %v283_v14, %v297_v21 }
 0x17d   : > { %v305_v23 = vmul.f32 1.442695, %v302_v22 }
 0x17e   : > { %v301_v24 = vpop.xlane.xlu1 %300  ;;  %v299_v25 = vpop.xlane.xlu0 %298 }
 0x17f   : > { %704 = vpow2.f32 %v305_v23  ;;  %v304_v26 = vsub.f32 %v293_v19, %v301_v24  ;;  %v303_v27 = vsub.f32 %v288_v18, %v299_v25 }
 0x181   : > { %v309_v28 = vmul.f32 1.442695, %v304_v26  ;;  %v307_v29 = vmul.f32 1.442695, %v303_v27 }
 0x183   : > { %706 = vpow2.f32 %v309_v28 }
 0x184   : > { %708 = vpow2.f32 %v307_v29 }
 0x189   : > { %v705_v30 = vpop.eup %704 }
 0x18a   : > { %311 = vadd.xlane.f32.xlu1 %v705_v30 }
 0x18d   : > { %v707_v31 = vpop.eup %706 }
 0x18e   : > { %v709_v32 = vpop.eup %708  ;;  %315 = vadd.xlane.f32.xlu1 %v707_v31 }
 0x18f   : > { %313 = vadd.xlane.f32.xlu0 %v709_v32 }
 0x217   : > { %v312_v33 = vpop.xlane.xlu1 %311 }
 0x218   : > { %710 = vlog2.f32 %v312_v33 }
 0x21b   : > { %v316_v34 = vpop.xlane.xlu1 %315 }
 0x21c   : > { %712 = vlog2.f32 %v316_v34  ;;  %v314_v35 = vpop.xlane.xlu0 %313 }
 0x21d   : > { %714 = vlog2.f32 %v314_v35 }
 0x222   : > { %v711_v36 = vpop.eup %710 }
 0x223   : > { %v318_v37 = vmul.f32 0.6931472, %v711_v36 }
 0x225   : > { %v323_v38 = vsub.f32 %v302_v22, %v318_v37 }
 0x226   : > { %v713_v39 = vpop.eup %712  ;;  %336 = sbr.rel (!%p856_p4) target bundleno = 618 (0x26a), region = 36 }
 0x227   : > { %v715_v40 = vpop.eup %714  ;;  %327 = vst.msk [vmem:[%s887_s14] sm:$0xff] %vm326_vm2, %v323_v38  ;;  %v322_v41 = vmul.f32 0.6931472, %v713_v39 }
 0x228   : > { %v320_v42 = vmul.f32 0.6931472, %v715_v40 }
 0x229   : > { %v325_v43 = vsub.f32 %v304_v26, %v322_v41 }
 0x22a   : > { %v324_v44 = vsub.f32 %v303_v27, %v320_v42 }
 0x22b   : > { %329 = vst.msk [vmem:[%s887_s14 + $0x10] sm:$0xff] %vm326_vm2, %v325_v43 }
 0x22c   : > { %328 = vst.msk [vmem:[%s887_s14 + $0x8] sm:$0xff] %vm326_vm2, %v324_v44 }
 0x22d   : > { %s937_s12 = smov (!%p339_p8, %s338_s12), 3 }
 0x22e   : > { %s564_s23 = sshll.u32 %s937_s12, 7 }
 0x22f   : > { %p567_p9 = scmp.eq.s32.totalorder %s564_s23, 0 }
 0x230   : > { %716 = sdivrem.u32 (!%p567_p9), %s937_s12, 3 }
 0x231   : > { %347 = sbr.rel (%p567_p9) target bundleno = 618 (0x26a), region = 40 }
 0x239   : > { %s905_s20 = spop.drf %716 }
 0x23a   : > { %p568_p10 = scmp.le.s32.totalorder %s905_s20, 0 }
 0x23b   : > { %s776_s15 = smov (!%p568_p10), %s899_s22   ;;  %s780_s24 = smov (!%p568_p10), %s887_s14  }
 0x23c   : > { %511 = sbr.rel (%p568_p10) target bundleno = 589 (0x24d), region = 116  ;;  %s784_s25 = smov (!%p568_p10), 0  }
 0x23d   : > { %s788_s26 = smov (!%p568_p10), 0  }
 0x243 LB: >> { %v415_v45 = vld [vmem:[%s782_s24] sm:$0xff]  ;;  %v417_v46 = vld [vmem:[%s782_s24 + $0x8] sm:$0xff]  ;;  %v419_v47 = vld [vmem:[%s782_s24 + $0x10] sm:$0xff]  ;;  %s421_s27 = sadd.s32 1, %s786_s25  ;;  %s409_s26 = sadd.s32 1, %s790_s26   ;;  %s790_s26 = sphi %s788_s26, %s409_s26   ;;  %s786_s25 = sphi %s784_s25, %s785_s25   ;;  %s782_s24 = sphi %s780_s24, %s426_s24   ;;  %s778_s15 = sphi %s776_s15, %s427_s15  }
 0x244   : >> { %416 = vst [vmem:[%s778_s15] sm:$0xff] %v415_v45  ;;  %418 = vst [vmem:[%s778_s15 + $0x8] sm:$0xff] %v417_v46  ;;  %p422_p11 = scmp.ge.s32.totalorder %s421_s27, %s905_s20  ;;  %p408_p12 = scmp.ge.s32.totalorder %s409_s26, %s905_s20 }
 0x245   : >> { %420 = vst [vmem:[%s778_s15 + $0x10] sm:$0xff] %v419_v47 }
 0x246   : >> { %s939_s27 = smov (%p422_p11, %s421_s27), 0  ;;  %411 = sbr.rel (!%p408_p12) target bundleno = 579 (0x243), region = 122 }
 0x247   : >> { %s424_s28 = smul.u32 24, %s939_s27  ;;  %s785_s25 = smov %s939_s27  }
 0x249   : >> { %s426_s24 = scalar_lea.vmem %s887_s14, %s424_s28 [#allocation2]   ;;  %s427_s15 = scalar_lea.vmem %s899_s22, %s424_s28  }
 0x24d PF: > { %718 = sdivrem.u32 %s937_s12, 3 }
 0x24e   : > { %s569_s29 = smul.u32 24, %s905_s20 }
 0x250   : > { %s432_s30 = scalar_lea.vmem %s887_s14, %s569_s29 [#allocation2]   ;;  %s434_s4 = scalar_lea.vmem %s899_s22, %s569_s29  }
 0x256   : > { %s719_s5 = spop.drf %718 }
 0x257   : > { %p571_p13 = scmp.le.s32.totalorder %s719_s5, 0 }
 0x258   : > { %s792_s6 = smov (!%p571_p13), %s434_s4   ;;  %s796_s7 = smov (!%p571_p13), %s432_s30  }
 0x259   : > { %525 = sbr.rel (%p571_p13) target bundleno = 618 (0x26a), region = 127  ;;  %s800_s8 = smov (!%p571_p13), 0  }
 0x25a   : > { %s804_s9 = smov (!%p571_p13), 0  }
 0x260 LB: >> { %v444_v48 = vld [vmem:[%s798_s7] sm:$0xff]  ;;  %s446_s10 = sadd.s32 1, %s802_s8  ;;  %s438_s9 = sadd.s32 1, %s806_s9   ;;  %s806_s9 = sphi %s804_s9, %s438_s9   ;;  %s802_s8 = sphi %s800_s8, %s801_s8   ;;  %s798_s7 = sphi %s796_s7, %s451_s7   ;;  %s794_s6 = sphi %s792_s6, %s452_s6  }
 0x261   : >> { %445 = vst [vmem:[%s794_s6] sm:$0xff] %v444_v48  ;;  %p447_p0 = scmp.ge.s32.totalorder %s446_s10, %s719_s5  ;;  %p437_p1 = scmp.ge.s32.totalorder %s438_s9, %s719_s5 }
 0x263   : >> { %s941_s10 = smov (%p447_p0, %s446_s10), 0  ;;  %440 = sbr.rel (!%p437_p1) target bundleno = 608 (0x260), region = 133 }
 0x264   : >> { %s572_s11 = sshll.u32 %s941_s10, 3  ;;  %s801_s8 = smov %s941_s10  }
 0x265   : >> { %s451_s7 = scalar_lea.vmem %s432_s30, %s572_s11 [#allocation2]   ;;  %s452_s6 = scalar_lea.vmem %s434_s4, %s572_s11  }
 0x26a PF: > { %p10_p2 = scmp.ge.s32.totalorder %s846_s16, 4   ;;  %s933_s12 = smov %s770_s13 }
 0x26b   : > { %s934_s13 = smov %s854_s19  ;;  %s935_s14 = smov %s846_s16 }
 0x26c   :  { %12 = sbr.rel (!%p10_p2) target bundleno = 2 (0x2), region = 144 }

</bundles_post_ra>
